<compile_context>
chip_gen: v7x
topology: tpu7x:2x2x1
jax: 0.10.0
libtpu: 0.0.40
codegen_flags: <defaults>
</compile_context>

<pallas_src>
import functools

import jax
import jax.numpy as jnp
from jax.experimental import pallas as pl
from jax.experimental.pallas import tpu as pltpu

EPSILON = 0.1


def _round_up(a, m):
    return -(-a // m) * m


def _ce_label_smooth_kernel(x_ref, t_ref, out_ref, *, true_b, num_classes,
                            epsilon, block_b):
    # x_ref: (tb, C) logits block (edge block may contain garbage rows).
    # t_ref: (tb, 1) int32 labels block.
    x = x_ref[...].astype(jnp.float32)
    tb, c = x.shape

    # Row validity for the partial edge batch block.
    row_ids = (pl.program_id(0) * block_b
               + jax.lax.broadcasted_iota(jnp.int32, (tb, 1), 0))
    row_valid = row_ids < true_b

    # Numerically stable log-sum-exp per row over the full class axis.
    m = jnp.max(x, axis=1, keepdims=True)
    lse = m + jnp.log(jnp.sum(jnp.exp(x - m), axis=1, keepdims=True))

    # Smoothed-label weights sum to 1:
    #   w_c      = eps/C + (1 - eps) * [c == target]
    #   per_row  = sum_c w_c * (lse - x_c) = lse - sum_c w_c * x_c
    t = t_ref[...]                                            # (tb, 1) int32
    class_ids = jax.lax.broadcasted_iota(jnp.int32, (1, c), 1)  # (1, C)
    eps_over_c = epsilon / num_classes
    w = jnp.where(class_ids == t, 1.0 - epsilon + eps_over_c, eps_over_c)
    weighted = jnp.sum(x * w, axis=1, keepdims=True)
    per_row = lse - weighted

    # NaN-safe masking of garbage rows, then tile-local partial sum.
    partial = jnp.sum(jnp.where(row_valid, per_row, 0.0))

    # Lane-dense partial-sum output block for this batch tile.
    out_ref[...] = jnp.full((1, 8, 128), partial, dtype=jnp.float32)


def cross_entropy_label_smooth(inputs, targets, epsilon=EPSILON):
    """inputs: (B, C) float logits; targets: (B,) int labels. Returns scalar loss."""
    B, C = inputs.shape
    itemsize = jnp.dtype(inputs.dtype).itemsize
    sub = {4: 8, 2: 16, 1: 32}.get(itemsize, 8)  # sublane alignment per dtype

    # Generation-aware VMEM budget (v7x has only 64 MiB per TC).
    try:
        vmem_cap = int(pltpu.get_tpu_info().vmem_capacity_bytes)
    except Exception:  # pragma: no cover - conservative fallback
        vmem_cap = 64 * 2**20
    vmem_limit = int(vmem_cap * 0.8)      # scoped limit we request
    tile_budget = int(vmem_limit * 0.8)   # headroom for output / misc scratch

    # VMEM layout pads the class axis to a lane multiple; budget with that.
    Cp = _round_up(C, 128)
    # Per-row VMEM cost: double-buffered input tile + ~3 f32 (tb, Cp) temps
    # (f32 upcast, exp intermediate, weighted product).
    bytes_per_row = 2 * Cp * itemsize + 3 * Cp * 4
    max_tb = max(sub, ((tile_budget // bytes_per_row) // sub) * sub)

    # Keep >= ~4 grid tiles so the parallel axis can span both TCs on v7x.
    parallel_cap = max(sub, _round_up(pl.cdiv(B, 4), sub))
    tb = max(sub, min(max_tb, parallel_cap))
    if tb >= B:
        tb = B  # block equals the full batch dim (always legal)
    num_tiles = pl.cdiv(B, tb)

    t = targets.astype(jnp.int32).reshape(B, 1)

    kernel = functools.partial(
        _ce_label_smooth_kernel,
        true_b=B, num_classes=C, epsilon=float(epsilon), block_b=tb)

    partials = pl.pallas_call(
        kernel,
        out_shape=jax.ShapeDtypeStruct((num_tiles, 8, 128), jnp.float32),
        grid=(num_tiles,),
        in_specs=[
            pl.BlockSpec((tb, C), lambda i: (i, 0)),   # full-C, unpadded logits
            pl.BlockSpec((tb, 1), lambda i: (i, 0)),   # labels
        ],
        out_specs=pl.BlockSpec((1, 8, 128), lambda i: (i, 0, 0)),
        compiler_params=pltpu.CompilerParams(
            dimension_semantics=("parallel",),
            vmem_limit_bytes=vmem_limit,
        ),
    )(inputs, t)

    # Tiny final reduction in the wrapper; divide by the TRUE batch size.
    return jnp.sum(partials[:, 0, 0]) / jnp.float32(B)


def _reference(inputs, targets, epsilon=EPSILON):
    _, C = inputs.shape
    log_probs = jax.nn.log_softmax(inputs.astype(jnp.float32), axis=1)
    onehot = jax.nn.one_hot(targets, C, dtype=jnp.float32)
    smoothed = (1.0 - epsilon) * onehot + epsilon / C
    return (-smoothed * log_probs).mean(0).sum()


if __name__ == "__main__":
    key = jax.random.PRNGKey(0)

    # Case 1: batch not a multiple of the tile, classes not a multiple of 128
    # -> exercises the partial edge batch block, row masking, multi-tile grid.
    k1, k2, k3, k4 = jax.random.split(key, 4)
    B1, C1 = 20, 300
    x1 = jax.random.normal(k1, (B1, C1), dtype=jnp.float32)
    t1 = jax.random.randint(k2, (B1,), 0, C1, dtype=jnp.int32)
    loss1 = cross_entropy_label_smooth(x1, t1)
    jax.block_until_ready(loss1)
    ref1 = _reference(x1, t1)
    assert jnp.allclose(loss1, ref1, rtol=1e-5, atol=1e-5), (loss1, ref1)

    # Case 2: single-tile path (block == full batch), lane-aligned class count.
    B2, C2 = 8, 384
    x2 = jax.random.normal(k3, (B2, C2), dtype=jnp.float32)
    t2 = jax.random.randint(k4, (B2,), 0, C2, dtype=jnp.int32)
    loss2 = cross_entropy_label_smooth(x2, t2)
    jax.block_until_ready(loss2)
    ref2 = _reference(x2, t2)
    assert jnp.allclose(loss2, ref2, rtol=1e-5, atol=1e-5), (loss2, ref2)

    print("KERNEL_OK")
</pallas_src>

<mosaic_0001>
module attributes {stable_mosaic.version = 11 : i64} {
  func.func @_ce_label_smooth_kernel(%arg0: i32, %arg1: memref<8x300xf32, #tpu.memory_space<vmem>>, %arg2: memref<8x1xi32, #tpu.memory_space<vmem>>, %arg3: memref<1x8x128xf32, #tpu.memory_space<vmem>>) attributes {dimension_semantics = [#tpu.dimension_semantics<parallel>], iteration_bounds = array<i64: 3>, scalar_prefetch = 0 : i64, scratch_operands = 0 : i64, tpu.core_type = #tpu.core_type<tc>, window_params = [{transform_indices = @transform_0, window_bounds = array<i64: 8, 300>}, {transform_indices = @transform_1, window_bounds = array<i64: 8, 1>}, {transform_indices = @transform_2, window_bounds = array<i64: 1, 8, 128>}]} {
    %c0 = arith.constant 0 : index
    %c0_0 = arith.constant 0 : index
    %0 = vector.load %arg1[%c0, %c0_0] : memref<8x300xf32, #tpu.memory_space<vmem>>, vector<8x300xf32>
    %c8_i32 = arith.constant 8 : i32
    %1 = arith.muli %arg0, %c8_i32 : i32
    %2 = tpu.iota {dimensions = array<i32: 0>} : vector<8x1xi32>
    %3 = vector.broadcast %1 : i32 to vector<8x1xi32>
    %4 = arith.addi %3, %2 : vector<8x1xi32>
    %c20_i32 = arith.constant 20 : i32
    %5 = vector.broadcast %c20_i32 : i32 to vector<8x1xi32>
    %6 = arith.cmpi slt, %4, %5 : vector<8x1xi32>
    %cst = arith.constant dense<0xFF800000> : vector<8xf32>
    %7 = vector.multi_reduction <maximumf>, %0, %cst [1] : vector<8x300xf32> to vector<8xf32>
    %8 = vector.shape_cast %7 : vector<8xf32> to vector<8x1xf32>
    %9 = vector.broadcast %8 : vector<8x1xf32> to vector<8x300xf32>
    %10 = arith.subf %0, %9 : vector<8x300xf32>
    %11 = math.exp %10 : vector<8x300xf32>
    %cst_1 = arith.constant dense<0.000000e+00> : vector<8xf32>
    %12 = vector.multi_reduction <add>, %11, %cst_1 [1] : vector<8x300xf32> to vector<8xf32>
    %13 = vector.shape_cast %12 : vector<8xf32> to vector<8x1xf32>
    %14 = math.log %13 : vector<8x1xf32>
    %15 = arith.addf %8, %14 : vector<8x1xf32>
    %c0_2 = arith.constant 0 : index
    %c0_3 = arith.constant 0 : index
    %16 = vector.load %arg2[%c0_2, %c0_3] : memref<8x1xi32, #tpu.memory_space<vmem>>, vector<8x1xi32>
    %17 = tpu.iota {dimensions = array<i32: 1>} : vector<1x300xi32>
    %18 = vector.broadcast %17 : vector<1x300xi32> to vector<8x300xi32>
    %19 = vector.broadcast %16 : vector<8x1xi32> to vector<8x300xi32>
    %20 = arith.cmpi eq, %18, %19 : vector<8x300xi32>
    %cst_4 = arith.constant 0.900333344 : f32
    %cst_5 = arith.constant 3.3333333E-4 : f32
    %21 = vector.broadcast %cst_4 : f32 to vector<8x300xf32>
    %22 = vector.broadcast %cst_5 : f32 to vector<8x300xf32>
    %23 = arith.select %20, %21, %22 : vector<8x300xi1>, vector<8x300xf32>
    %24 = arith.mulf %0, %23 : vector<8x300xf32>
    %cst_6 = arith.constant dense<0.000000e+00> : vector<8xf32>
    %25 = vector.multi_reduction <add>, %24, %cst_6 [1] : vector<8x300xf32> to vector<8xf32>
    %26 = vector.shape_cast %25 : vector<8xf32> to vector<8x1xf32>
    %27 = arith.subf %15, %26 : vector<8x1xf32>
    %cst_7 = arith.constant 0.000000e+00 : f32
    %28 = vector.broadcast %cst_7 : f32 to vector<8x1xf32>
    %29 = arith.select %6, %27, %28 : vector<8x1xi1>, vector<8x1xf32>
    %30 = vector.shape_cast %29 : vector<8x1xf32> to vector<1x8x1xf32>
    %cst_8 = arith.constant dense<0.000000e+00> : vector<1xf32>
    %31 = vector.multi_reduction <add>, %30, %cst_8 [1, 2] : vector<1x8x1xf32> to vector<1xf32>
    %32 = vector.shape_cast %31 : vector<1xf32> to vector<1x1x1xf32>
    %33 = vector.extract %32[0, 0, 0] : f32 from vector<1x1x1xf32>
    %34 = vector.broadcast %33 : f32 to vector<1x8x128xf32>
    %c0_9 = arith.constant 0 : index
    %c0_10 = arith.constant 0 : index
    %c0_11 = arith.constant 0 : index
    %35 = vector.load %arg3[%c0_9, %c0_10, %c0_11] : memref<1x8x128xf32, #tpu.memory_space<vmem>>, vector<1x8x128xf32>
    tpu.vector_store %arg3[%c0_9, %c0_10, %c0_11], %34 {strides = array<i32>} : memref<1x8x128xf32, #tpu.memory_space<vmem>>, vector<1x8x128xf32>,
    return
  }
  func.func @transform_0(%arg0: i32) -> (i32, i32) {
    %c0_i32 = arith.constant 0 : i32
    %c0_i32_0 = arith.constant 0 : i32
    return %arg0, %c0_i32 : i32, i32
  }
  func.func @transform_1(%arg0: i32) -> (i32, i32) {
    %c0_i32 = arith.constant 0 : i32
    %c0_i32_0 = arith.constant 0 : i32
    return %arg0, %c0_i32 : i32, i32
  }
  func.func @transform_2(%arg0: i32) -> (i32, i32, i32) {
    %c0_i32 = arith.constant 0 : i32
    %c0_i32_0 = arith.constant 0 : i32
    %c0_i32_1 = arith.constant 0 : i32
    return %arg0, %c0_i32, %c0_i32_0 : i32, i32, i32
  }
}

</mosaic_0001>

<bundles_post_ra>
// kernel: tpu_custom_call.1
= control target key start
LH: loop header
LB: loop body
LE: loop exit
PB: predicated region body
PF: predicated region fallthrough
CT: control target
= control target key end

     0   :  { %7 = vsyncpa [#allocation3], 0  ;;  %s696_s0 = inlined_call_operand.hbm [shape: f32[20,300], index: 0, kind: input, shape index: {}]   ;;  %s697_s1 = inlined_call_operand.vmem [shape: s32[20,1], index: 1, kind: input, shape index: {}]   ;;  %s698_s2 = inlined_call_operand.hbm [shape: f32[3,8,128], index: 2, kind: output, shape index: {}]  }
   0x1   :  { %9 = vsyncpa [#allocation3 + $0x1], 0 }
   0x2   :  { %10 = vsyncpa [#allocation4], 0 }
   0x3   :  { %12 = vsyncpa [#allocation4 + $0x1], 0  ;;  %s533_s9 = smov 0   ;;  %s535_s10 = smov 0  }
   0x4   :  { %s537_s11 = smov 0   ;;  %s539_s12 = smov 0  }
   0x5 LB: > { %s554_s13 = sadd.s32 4294967295, %s512_s12   ;;  %s342_s14 = sadd.s32 4294967294, %s512_s12   ;;  %s512_s12 = sphi %s539_s12, %s711_s12   ;;  %s508_s11 = sphi %s537_s11, %s710_s11   ;;  %s504_s10 = sphi %s535_s10, %s709_s10   ;;  %s500_s9 = sphi %s533_s9, %s708_s9  }
   0x6   : > { %s558_s15 = sadd.s32 1, %s512_s12   ;;  %s25_s16 = sadd.s32 1, %s508_s11 }
   0x7   : > { %s22_s17 = ssub.s32 %s512_s12, %s558_s15  ;;  %p32_p0 = scmp.ne.s32.totalorder %s508_s11, %s504_s10 }
   0x8   : > { %p23_p1 = scmp.eq.s32.totalorder %s22_s17, 0  ;;  %p33_p2 = scmp.eq.s32.totalorder %s512_s12, 0 }
   0x9   : > { %p38_p3 = scmp.ne.s32.totalorder %s504_s10, %s500_s9  ;;  %p39_p4 = scmp.eq.s32.totalorder %s554_s13, 0 }
   0xa   : > { %s570_s18 = scalar_select %p23_p1, %s508_s11, %s25_s16  }
   0xb   : > { %p34_p5 = por %p33_p2, %p32_p0  ;;  %p572_p6 = por %p39_p4, %p38_p3 }
   0xc   : > { %p88_p7 = scmp.eq.s32.totalorder %s554_s13, 2  ;;  %p94_p8 = scmp.eq.s32.totalorder %s342_s14, 2 }
   0xd   : > { %p371_p9 = scmp.lt.s32.totalorder %s512_s12, 3  ;;  %s114_s22 = sand.u32 1, %s508_s11  }
   0xe   : > { %p578_p10 = por %p88_p7, %p32_p0  ;;  %p582_p11 = por %p94_p8, %p38_p3 }
   0xf   : > { %s355_s23 = smul.u32 384, %s512_s12  ;;  %p593_p12 = pnand %p371_p9, %p34_p5 }
  0x10   : > { %s701_s20 = scalar_select %p578_p10, 1, 0 }
  0x11   : > { %s702_s21 = scalar_select %p582_p11, 1, 0 }
  0x12   : > { %s354_s24 = smul.u32 24, %s114_s22  ;;  %s591_s27 = scalar_lea.hbm %s696_s0, %s355_s23 }
  0x13   : > { %s115_s3 = scalar_lea.sflag [#allocation3], %s114_s22  ;;  %s416_s4 = scalar_lea.hbm %s591_s27, 384 }
  0x14   : > { %s118_s29 = scalar_lea.vmem [#allocation2], %s354_s24  ;;  %p417_p1 = scmp.ne.s32.totalorder %s591_s27, %s416_s4 }
  0x15   : > { %s126_s30 = sshll.u32 %s118_s29, 4  ;;  %p418_p2 = pneg %p593_p12  ;;  %s598_s30 = int_to_ptr.vmem [resolvable:$true] %s126_s30 }
  0x16   : > { %s421_s7 = scalar_lea.hbm %s696_s0, 1152  ;;  %p422_p5 = scmp.lt.u32.totalorder %s591_s27, %s696_s0 }
  0x17   : > { %p419_p3 = pnand %p418_p2, %p417_p1  ;;  %p423_p7 = scmp.lt.u32.totalorder %s421_s7, %s416_s4 }
  0x18   : > { %p425_p9 = scmp.lt.u32.totalorder %s416_s4, %s591_s27 }
  0x19   : > { %p420_p4 = pneg %p419_p3  ;;  %p424_p8 = por %p423_p7, %p422_p5 }
  0x1b   : > { %p426_p13 = por %p425_p9, %p424_p8 }
  0x1d   : > { %p427_p0 = pnand %p426_p13, %p420_p4 }
  0x1f   : > { %430 = shalt.err (!%p427_p0)
}
  0x20   : > { %s431_s16 = scalar_lea.vmem %s598_s30, 384  ;;  %s514_s17 = smov [#allocation2]  }
  0x21   : > { %p432_p1 = scmp.ne.s32.totalorder %s598_s30, %s431_s16  ;;  %s436_s22 = sshll.u32 %s514_s17, 4  ;;  %s437_s22 = int_to_ptr.vmem [resolvable:$false] %s436_s22 }
  0x22   : > { %s438_s23 = scalar_lea.vmem %s437_s22, 768  ;;  %p439_p10 = scmp.lt.s32.totalorder %s598_s30, %s437_s22 }
  0x23   : > { %p434_p3 = pnand %p432_p1, %p418_p2  ;;  %p440_p5 = scmp.lt.s32.totalorder %s438_s23, %s431_s16 }
  0x25   : > { %p435_p11 = pneg %p434_p3  ;;  %p441_p7 = por %p440_p5, %p439_p10 }
  0x27   : > { %p442_p8 = pnand %p441_p7, %p435_p11 }
  0x29   : > { %445 = shalt.err (!%p442_p8)
}
  0x2a   : > { %366 = dma.hbm_to_vmem [thread:$0]  (!%p593_p12), %s591_s27, 384, %s598_s30, %s115_s3  }
  0x2b   : > { %p704_p13 = scmp.lt.s32.totalorder %s512_s12, 4  ;;  %p705_p0 = scmp.ge.s32.totalorder %s512_s12, 1 }
  0x2d   : > { %p139_p2 = pnand %p705_p0, %p704_p13 }
  0x2e   : > { %s631_s24 = sand.u32 (!%p139_p2), 1, %s504_s10  }
  0x2f   : > { %142 = sbr.rel (%p139_p2) target bundleno = 602 (0x25a), region = 28  ;;  %s145_s26 = scalar_lea.sflag (!%p139_p2), [#allocation3], %s631_s24 }
  0x30   : > { %s356_s25 = smul.u32 (!%p139_p2), 24, %s631_s24 }
  0x32   : > { %s148_s29 = scalar_lea.vmem (!%p139_p2), [#allocation2], %s356_s25 }
  0x36   : > { %491 = dma.done.wait (%p572_p6), %s145_s26, 384  }
  0x37   : > { %493 = vsyncadd (%p572_p6), %s145_s26, 4294966912  ;;  %v515_v0 = vmov 0   ;;  %vm186_vm0 = vcmask 359424   ;;  %v177_v1 = vld [vmem:[%s148_s29] sm:$0xff]  ;;  %v178_v2 = vld [vmem:[%s148_s29 + $0x8] sm:$0xff]  ;;  %p173_p10 = scmp.lt.s32.totalorder %s554_s13, 2  ;;  %v181_v8 = vlaneseq }
  0x38   : > { %407 = vset.pattern.permute.xlu0 %v515_v0  ;;  %v179_v3 = vld [vmem:[%s148_s29 + $0x10] sm:$0xff]  ;;  %v188_v5 = vmax.f32 %v177_v1, %v178_v2  ;;  %v516_v20 = vmov 0.00033333333   ;;  %s349_s4 = sshll.u32 %s554_s13, 3  ;;  %vm233_vm5 = vcmask 7168   ;;  %s347_s5 = sshll.u32 %s631_s24, 3 }
  0x39   : > { %v187_v4 = vsel %vm186_vm0, %v179_v3, -inf  ;;  %s174_s27 = scalar_select %p173_p10, %s554_s13, 2  ;;  %v211_v13 = vand.u32 127, %v181_v8  ;;  %v182_v37 = vshrl.u32 %v181_v8, 7  ;;  %v183_v38 = vstv %s349_s4 }
  0x3a   : > { %v189_v6 = vmax.f32 %v188_v5, %v187_v4  ;;  %s172_s6 = scalar_lea.vmem [#allocation5], %s347_s5  ;;  %s351_s8 = sshll.u32 %s554_s13, 7 }
  0x3b   : > { %s348_s28 = sshll.u32 %s174_s27, 3  ;;  %v212_v17 = vadd.s32 128, %v211_v13  ;;  %v213_v18 = vadd.s32 256, %v211_v13  ;;  %v184_v40 = vadd.s32 %v183_v38, %v182_v37  ;;  %s260_s7 = sshll.u32 %s172_s6, 4  ;;  %s650_s7 = int_to_ptr.vmem [resolvable:$true] %s260_s7 }
  0x3c   : > { %190 = vmax.xlane.f32.xlu0 %v189_v6  ;;  %s176_s19 = scalar_lea.vmem %s697_s1, %s348_s28  ;;  %s655_s22 = scalar_lea.hbm %s698_s2, %s351_s8 }
  0x3d   : > { %v209_v7 = vld [vmem:[%s176_s19] sm:$0xff]  ;;  %vm185_vm4 = vcmp.lt.s32.totalorder %v184_v40, 20  ;;  %s247_s23 = scalar_lea.sflag [#allocation4], %s631_s24  ;;  %s446_s25 = scalar_lea.vmem %s650_s7, 128 }
  0x3e   : > { %p447_p6 = scmp.ne.s32.totalorder %s650_s7, %s446_s25  ;;  %p706_p11 = scmp.ne.s32.totalorder %s701_s20, 0 }
  0x3f   : > { %s517_s13 = smov [#allocation5]  }
  0x40   : > { %p448_p12 = pnand %p447_p6, %p706_p11  ;;  %s450_s26 = sshll.u32 %s517_s13, 4  ;;  %s451_s26 = int_to_ptr.vmem [resolvable:$false] %s450_s26 }
  0x41   : > { %s452_s29 = scalar_lea.vmem %s451_s26, 256  ;;  %p453_p9 = scmp.lt.s32.totalorder %s650_s7, %s451_s26 }
  0x42   : > { %p449_p4 = pneg %p448_p12  ;;  %p454_p1 = scmp.lt.s32.totalorder %s452_s29, %s446_s25 }
  0x44   : > { %p455_p3 = por %p454_p1, %p453_p9 }
  0x46   : > { %p456_p5 = pnand %p455_p3, %p449_p4 }
  0x52   : > { %215 = vperm.xlu0 %407, %v209_v7  }
  0xc9   : > { %v191_v9 = vpop.xlane.xlu0 %190 }
  0xca   : > { %v192_v10 = vsub.f32 %v177_v1, %v191_v9  ;;  %v193_v11 = vsub.f32 %v178_v2, %v191_v9  ;;  %v194_v12 = vsub.f32 %v179_v3, %v191_v9 }
  0xcc   : > { %v195_v14 = vmul.f32 1.442695, %v192_v10  ;;  %v197_v15 = vmul.f32 1.442695, %v193_v11  ;;  %v199_v16 = vmul.f32 1.442695, %v194_v12 }
  0xce   : > { %408 = vpow2.f32 %v195_v14 }
  0xcf   : > { %410 = vpow2.f32 %v197_v15 }
  0xd0   : > { %412 = vpow2.f32 %v199_v16 }
  0xd1   : > { %v216_v19 = vpop.permute.xlu0 %215 }
  0xd2   : > { %vm217_vm1 = vcmp.eq.s32.totalorder %v211_v13, %v216_v19  ;;  %vm218_vm2 = vcmp.eq.s32.totalorder %v212_v17, %v216_v19  ;;  %vm219_vm3 = vcmp.eq.s32.totalorder %v213_v18, %v216_v19 }
  0xd3   : > { %v220_v21 = vsel %vm217_vm1, 0.90033334, %v516_v20  ;;  %v221_v22 = vsel %vm218_vm2, 0.90033334, %v516_v20  ;;  %v222_v23 = vsel %vm219_vm3, 0.90033334, %v516_v20 }
  0xd4   : > { %v223_v24 = vmul.f32 %v220_v21, %v177_v1  ;;  %v224_v25 = vmul.f32 %v221_v22, %v178_v2  ;;  %v225_v26 = vmul.f32 %v222_v23, %v179_v3 }
  0xd6   : > { %v226_v31 = vadd.f32 %v224_v25, %v223_v24  ;;  %v227_v33 = vsel %vm186_vm0, %v225_v26, 0.0 }
  0xd8   : > { %v409_v27 = vpop.eup %408  ;;  %v228_v35 = vadd.f32 %v227_v33, %v226_v31 }
  0xd9   : > { %v411_v28 = vpop.eup %410 }
  0xda   : > { %v413_v29 = vpop.eup %412  ;;  %v201_v30 = vadd.f32 %v411_v28, %v409_v27 }
  0xdb   : > { %v202_v32 = vsel %vm186_vm0, %v413_v29, 0.0 }
  0xdc   : > { %v203_v34 = vadd.f32 %v202_v32, %v201_v30 }
  0xde   : > { %204 = vadd.xlane.f32.xlu1 %v203_v34 }
  0xe2   : > { %229 = vadd.xlane.f32.xlu1 %v228_v35 }
 0x16b   : > { %v205_v36 = vpop.xlane.xlu1 %204 }
 0x16c   : > { %414 = vlog2.f32 %v205_v36 }
 0x16f   : > { %v230_v42 = vpop.xlane.xlu1 %229 }
 0x176   : > { %v415_v39 = vpop.eup %414 }
 0x177   : > { %v207_v41 = vmul.f32 0.6931472, %v415_v39 }
 0x179   : > { %v208_v43 = vadd.f32 %v207_v41, %v191_v9 }
 0x17b   : > { %v231_v44 = vsub.f32 %v208_v43, %v230_v42 }
 0x17d   : > { %v232_v45 = vsel %vm185_vm4, %v231_v44, 0.0 }
 0x17e   : > { %v234_v46 = vsel %vm233_vm5, %v232_v45, 0.0 }
 0x17f   : > { %235 = vadd.xlane.f32.xlu1 %v234_v46 }
 0x20c   : > { %v236_v47 = vpop.xlane.xlu1 %235 }
 0x20d   : > { %v237_v48 = vrot.slane %v236_v47, 4 }
 0x20f   : > { %v238_v49 = vadd.f32 %v237_v48, %v236_v47 }
 0x211   : > { %v239_v50 = vrot.slane %v238_v49, 2 }
 0x213   : > { %v240_v51 = vadd.f32 %v239_v50, %v238_v49 }
 0x215   : > { %v241_v52 = vrot.slane %v240_v51, 1 }
 0x217   : > { %v242_v53 = vadd.f32 %v241_v52, %v240_v51 }
 0x219   : > { %357 = vpush %v242_v53 }
 0x24a   : > { %s358_s14 = spop %357 }
 0x24b   : > { %v244_v54 = vstv %s358_s14 }
 0x24c   : > { %245 = vst [vmem:[%s172_s6] sm:$0xff] %v244_v54 }
 0x24d   : > { %459 = shalt.err (!%p456_p5)
}
 0x24e   : > { %s460_s24 = scalar_lea.hbm %s655_s22, 128  ;;  %s464_s30 = scalar_lea.hbm %s698_s2, 384 }
 0x24f   : > { %p461_p7 = scmp.ne.s32.totalorder %s655_s22, %s460_s24  ;;  %p465_p0 = scmp.lt.u32.totalorder %s655_s22, %s698_s2 }
 0x250   : > { %p466_p2 = scmp.lt.u32.totalorder %s464_s30, %s460_s24  ;;  %p468_p6 = scmp.lt.u32.totalorder %s460_s24, %s655_s22 }
 0x251   : > { %p462_p8 = pnand %p461_p7, %p706_p11 }
 0x252   : > { %p467_p10 = por %p466_p2, %p465_p0 }
 0x253   : > { %p463_p13 = pneg %p462_p8 }
 0x254   : > { %p469_p12 = por %p468_p6, %p467_p10 }
 0x256   : > { %p470_p4 = pnand %p469_p12, %p463_p13 }
 0x258   : > { %473 = shalt.err (!%p470_p4)
}
 0x259   : > { %361 = dma.vmem_to_hbm [thread:$0]  (%p706_p11), %s650_s7, 128, %s655_s22, %s247_s23  }
 0x25a PF: > { %p372_p9 = scmp.ge.s32.totalorder %s512_s12, 2  ;;  %s272_s4 = sand.u32 1, %s500_s9  }
 0x25b   : > { %p707_p1 = scmp.ne.s32.totalorder %s702_s21, 0  ;;  %s273_s5 = scalar_lea.sflag [#allocation4], %s272_s4 }
 0x25d   : > { %p368_p3 = pnand %p372_p9, %p707_p1 }
 0x25f   : > { %495 = dma.done.wait (!%p368_p3), %s273_s5, 128  }
 0x260   : > { %497 = vsyncadd (!%p368_p3), %s273_s5, 4294967168  ;;  %p15_p5 = scmp.ge.s32.totalorder %s558_s15, 5   ;;  %s708_s9 = smov %s504_s10 }
 0x261   : > { %s709_s10 = smov %s508_s11  ;;  %s710_s11 = smov %s570_s18 }
 0x262   : > { %s711_s12 = smov %s558_s15  ;;  %17 = sbr.rel (!%p15_p5) target bundleno = 5 (0x5), region = 76 }
 0x269   :  { %278 = vsyncpa [#allocation3], 1 }
 0x26a   :  { %280 = vsyncpa [#allocation3 + $0x1], 1 }
 0x26b   :  { %281 = vsyncpa [#allocation4], 1 }
 0x26c   :  { %283 = vsyncpa [#allocation4 + $0x1], 1 }

</bundles_post_ra>
